<compile_context>
chip_gen: v5e
topology: v5e:2x2
jax: 0.10.0
libtpu: 0.0.40
codegen_flags: <defaults>
</compile_context>

<pallas_src>
import functools

import jax
import jax.numpy as jnp
from jax.experimental import pallas as pl
from jax.experimental.pallas import tpu as pltpu

TAU = 5.0        # LIFNode tau
V_TH = 0.5       # v_threshold
# v_reset = 0.0 (hard reset), decay_input = False, detach_reset only affects grads.


def _pool_lif_kernel(x_ref, aw_ref, spike_ref, v_ref, *, ksize, stride):
    """Fused AvgPool2d(k,s,pad=0) + LIF membrane update + spike for one tile.

    x_ref     : (P, H, W)    one time step of a tile of P = (n,c) planes
    aw_ref    : (W, W')      0/1 window-selection matrix for lane-axis pooling
    spike_ref : (P, H', W')  output spikes for this (plane-tile, t)
    v_ref     : (P, H', W')  VMEM scratch: LIF membrane, persists across T
    """
    t = pl.program_id(1)

    @pl.when(t == 0)
    def _():
        v_ref[...] = jnp.zeros_like(v_ref)

    P, H, W = x_ref.shape
    WP = aw_ref.shape[1]
    HP = spike_ref.shape[1]

    x = x_ref[...].astype(jnp.float32)

    # --- average pooling ---------------------------------------------------
    # W (lane) axis: one matmul against the (W, W') 0/1 window matrix (MXU,
    # contraction on the lane axis; no strided slices / im2col copies).
    xw = jnp.dot(x.reshape(P * H, W), aw_ref[...],
                 preferred_element_type=jnp.float32).reshape(P, H, WP)
    # H (sublane) axis: unrolled static window sums (H' is small after pool).
    rows = [jnp.sum(xw[:, i * stride:i * stride + ksize, :],
                    axis=1, keepdims=True) for i in range(HP)]
    pooled = jnp.concatenate(rows, axis=1) * (1.0 / float(ksize * ksize))

    # --- LIF neuron (tau=5, decay_input=False, hard reset to 0) -------------
    v = v_ref[...] * (1.0 - 1.0 / TAU) + pooled
    spike = (v >= V_TH).astype(jnp.float32)
    spike_ref[...] = spike
    v_ref[...] = v * (1.0 - spike)


def _pick_plane_tile(nc, h, w, *, bytes_per_elem=4, vmem_budget=2 << 20):
    """Largest divisor of nc whose input tile fits the per-block VMEM budget.

    Also keeps >= 2 plane tiles when possible so the leading "parallel" grid
    axis is non-trivial (both TensorCores usable on v7x)."""
    plane_bytes = h * w * bytes_per_elem
    cap = max(1, min(nc, vmem_budget // max(plane_bytes, 1)))
    if nc >= 2:
        cap = min(cap, nc // 2)
    for d in range(cap, 0, -1):
        if nc % d == 0:
            return d
    return 1


@functools.partial(jax.jit, static_argnames=("kernel_size", "stride"))
def spiking_avg_pool2d_forward(x_tnchw, *, kernel_size=5, stride=3):
    """JAX wrapper matching SpikingAvgPool2d.forward (padding=0).

    x_tnchw : (T, N, C, H, W) float32
    returns : (T, N, C, H', W') float32 spike train
    """
    T, N, C, H, W = x_tnchw.shape
    HP = (H - kernel_size) // stride + 1
    WP = (W - kernel_size) // stride + 1
    assert HP >= 1 and WP >= 1, "input smaller than pooling window"
    NC = N * C

    # Free reshape: keep native NCHW memory order, no wrapper transpose/pad.
    x = x_tnchw.reshape(T, NC, H, W).astype(jnp.float32)

    # 0/1 window-selection matrix for the lane-axis (W) pooling matmul.
    r = jnp.arange(W)[:, None]
    j = jnp.arange(WP)[None, :]
    a_w = ((r >= stride * j) & (r < stride * j + kernel_size)).astype(jnp.float32)

    p_tile = _pick_plane_tile(NC, H, W)
    grid = (NC // p_tile, T)   # plane tiles ("parallel"), time ("arbitrary")

    kernel = functools.partial(_pool_lif_kernel, ksize=kernel_size, stride=stride)

    spike = pl.pallas_call(
        kernel,
        out_shape=jax.ShapeDtypeStruct((T, NC, HP, WP), jnp.float32),
        grid_spec=pltpu.PrefetchScalarGridSpec(
            num_scalar_prefetch=0,
            grid=grid,
            in_specs=[
                # x: (T, NC, H, W) -> block (squeeze T, p_tile, H, W)
                pl.BlockSpec((pl.Squeezed(), p_tile, H, W),
                             lambda p, t: (t, p, 0, 0)),
                # pooling matrix: resident, never changes
                pl.BlockSpec((W, WP), lambda p, t: (0, 0)),
            ],
            out_specs=pl.BlockSpec((pl.Squeezed(), p_tile, HP, WP),
                                   lambda p, t: (t, p, 0, 0)),
            # LIF membrane lives only in VMEM scratch (no HBM state traffic).
            scratch_shapes=[pltpu.VMEM((p_tile, HP, WP), jnp.float32)],
        ),
        compiler_params=pltpu.CompilerParams(
            dimension_semantics=("parallel", "arbitrary"),
            vmem_limit_bytes=32 * 1024 * 1024,   # portable incl. v7x (64 MiB VMEM)
        ),
    )(x, a_w)

    return spike.reshape(T, N, C, HP, WP)


def _reference_forward(x, kernel_size=5, stride=3):
    """Pure-JAX reference: AvgPool2d (pad=0) + multi-step LIF."""
    pooled = jax.lax.reduce_window(
        x, 0.0, jax.lax.add,
        window_dimensions=(1, 1, 1, kernel_size, kernel_size),
        window_strides=(1, 1, 1, stride, stride),
        padding="VALID") / float(kernel_size * kernel_size)

    def step(v, p):
        v = v * (1.0 - 1.0 / TAU) + p
        s = (v >= V_TH).astype(p.dtype)
        return v * (1.0 - s), s

    _, spikes = jax.lax.scan(step, jnp.zeros_like(pooled[0]), pooled)
    return spikes


def _check(x):
    spikes = spiking_avg_pool2d_forward(x)
    jax.block_until_ready(spikes)
    spikes_ref = _reference_forward(x)
    # Spikes are binary; allow a tiny mismatch fraction for membranes that land
    # within float rounding of the 0.5 threshold (different f32 summation order
    # between the MXU pooling and reduce_window).
    mismatch = float(jnp.mean(jnp.abs(spikes - spikes_ref)))
    assert mismatch < 0.01, f"spike mismatch fraction {mismatch}"
    return spikes


if __name__ == "__main__":
    key = jax.random.PRNGKey(0)

    # Main config: T=8 time steps, batch=2, channels=4, spatial=16.
    T, N, C, H, W = 8, 2, 4, 16, 16
    x = jax.random.normal(key, (T, N, C, H, W), jnp.float32) + 0.3
    spikes = _check(x)
    assert spikes.shape == (T, N, C, 4, 4)

    # Second config: non-divisible spatial dims (floor behavior of AvgPool2d).
    key2 = jax.random.PRNGKey(1)
    x2 = jax.random.normal(key2, (4, 1, 8, 16, 23), jnp.float32) + 0.3
    spikes2 = _check(x2)
    assert spikes2.shape == (4, 1, 8, 4, 7)

    # TODO(synk): padding > 0 with count_include_pad=False (per-window divisor)
    # is not implemented; the module's default padding=0 makes it moot here.
    # TODO(synk): DSpike surrogate gradient is backward-only; forward heaviside
    # is exact.  LIF membrane is assumed 0 at the start of each forward call
    # (standard usage after spikingjelly functional.reset_net).

    print("KERNEL_OK")
</pallas_src>

<mosaic_0001>
module attributes {stable_mosaic.version = 11 : i64} {
  func.func @_pool_lif_kernel(%arg0: i32, %arg1: i32, %arg2: memref<1x4x16x16xf32, #tpu.memory_space<vmem>>, %arg3: memref<16x4xf32, #tpu.memory_space<vmem>>, %arg4: memref<1x4x4x4xf32, #tpu.memory_space<vmem>>, %arg5: memref<4x4x4xf32, #tpu.memory_space<vmem>>) attributes {dimension_semantics = [#tpu.dimension_semantics<parallel>, #tpu.dimension_semantics<arbitrary>], iteration_bounds = array<i64: 2, 8>, scalar_prefetch = 0 : i64, scratch_operands = 1 : i64, tpu.core_type = #tpu.core_type<tc>, window_params = [{transform_indices = @transform_0, window_bounds = array<i64: 1, 4, 16, 16>}, {pipeline_mode = #tpu.pipeline_mode<synchronous>, transform_indices = @transform_1, window_bounds = array<i64: 16, 4>}, {transform_indices = @transform_2, window_bounds = array<i64: 1, 4, 4, 4>}]} {
    %c0_i32 = arith.constant 0 : i32
    %0 = arith.cmpi eq, %arg1, %c0_i32 : i32
    %1 = arith.extui %0 : i1 to i32
    %c0_i32_0 = arith.constant 0 : i32
    %2 = arith.cmpi ne, %1, %c0_i32_0 : i32
    scf.if %2 {
      %cst_24 = arith.constant 0.000000e+00 : f32
      %39 = vector.broadcast %cst_24 : f32 to vector<4x4x4xf32>
      %c0_25 = arith.constant 0 : index
      %c0_26 = arith.constant 0 : index
      %c0_27 = arith.constant 0 : index
      %40 = vector.load %arg5[%c0_25, %c0_26, %c0_27] : memref<4x4x4xf32, #tpu.memory_space<vmem>>, vector<4x4x4xf32>
      tpu.vector_store %arg5[%c0_25, %c0_26, %c0_27], %39 {strides = array<i32>} : memref<4x4x4xf32, #tpu.memory_space<vmem>>, vector<4x4x4xf32>,
    } else {
    }
    %c0 = arith.constant 0 : index
    %c0_1 = arith.constant 0 : index
    %c0_2 = arith.constant 0 : index
    %c0_3 = arith.constant 0 : index
    %3 = vector.load %arg2[%c0, %c0_1, %c0_2, %c0_3] : memref<1x4x16x16xf32, #tpu.memory_space<vmem>>, vector<1x4x16x16xf32>
    %4 = vector.shape_cast %3 : vector<1x4x16x16xf32> to vector<4x16x16xf32>
    %5 = vector.shape_cast %4 : vector<4x16x16xf32> to vector<64x16xf32>
    %c0_4 = arith.constant 0 : index
    %c0_5 = arith.constant 0 : index
    %6 = vector.load %arg3[%c0_4, %c0_5] : memref<16x4xf32, #tpu.memory_space<vmem>>, vector<16x4xf32>
    %cst = arith.constant dense<0.000000e+00> : vector<64x4xf32>
    %7 = tpu.matmul %5, %6, %cst {dimension_numbers = #tpu.dot_dimension_numbers<[1], [0], [0], [1], [0, 0, 1, 1], [], []>} : vector<64x16xf32>, vector<16x4xf32>, vector<64x4xf32> -> vector<64x4xf32>
    %8 = vector.shape_cast %7 : vector<64x4xf32> to vector<4x16x4xf32>
    %9 = vector.extract_strided_slice %8 {offsets = [0, 0, 0], sizes = [4, 5, 4], strides = [1, 1, 1]} : vector<4x16x4xf32> to vector<4x5x4xf32>
    %cst_6 = arith.constant dense<0.000000e+00> : vector<4x4xf32>
    %10 = vector.multi_reduction <add>, %9, %cst_6 [1] : vector<4x5x4xf32> to vector<4x4xf32>
    %11 = vector.shape_cast %10 : vector<4x4xf32> to vector<4x1x4xf32>
    %12 = vector.extract_strided_slice %8 {offsets = [0, 3, 0], sizes = [4, 5, 4], strides = [1, 1, 1]} : vector<4x16x4xf32> to vector<4x5x4xf32>
    %cst_7 = arith.constant dense<0.000000e+00> : vector<4x4xf32>
    %13 = vector.multi_reduction <add>, %12, %cst_7 [1] : vector<4x5x4xf32> to vector<4x4xf32>
    %14 = vector.shape_cast %13 : vector<4x4xf32> to vector<4x1x4xf32>
    %15 = vector.extract_strided_slice %8 {offsets = [0, 6, 0], sizes = [4, 5, 4], strides = [1, 1, 1]} : vector<4x16x4xf32> to vector<4x5x4xf32>
    %cst_8 = arith.constant dense<0.000000e+00> : vector<4x4xf32>
    %16 = vector.multi_reduction <add>, %15, %cst_8 [1] : vector<4x5x4xf32> to vector<4x4xf32>
    %17 = vector.shape_cast %16 : vector<4x4xf32> to vector<4x1x4xf32>
    %18 = vector.extract_strided_slice %8 {offsets = [0, 9, 0], sizes = [4, 5, 4], strides = [1, 1, 1]} : vector<4x16x4xf32> to vector<4x5x4xf32>
    %cst_9 = arith.constant dense<0.000000e+00> : vector<4x4xf32>
    %19 = vector.multi_reduction <add>, %18, %cst_9 [1] : vector<4x5x4xf32> to vector<4x4xf32>
    %20 = vector.shape_cast %19 : vector<4x4xf32> to vector<4x1x4xf32>
    %21 = tpu.concatenate %11, %14, %17, %20 in 1 : vector<4x1x4xf32>, vector<4x1x4xf32>, vector<4x1x4xf32>, vector<4x1x4xf32> -> vector<4x4x4xf32>
    %cst_10 = arith.constant 4.000000e-02 : f32
    %22 = vector.broadcast %cst_10 : f32 to vector<4x4x4xf32>
    %23 = arith.mulf %21, %22 : vector<4x4x4xf32>
    %c0_11 = arith.constant 0 : index
    %c0_12 = arith.constant 0 : index
    %c0_13 = arith.constant 0 : index
    %24 = vector.load %arg5[%c0_11, %c0_12, %c0_13] : memref<4x4x4xf32, #tpu.memory_space<vmem>>, vector<4x4x4xf32>
    %cst_14 = arith.constant 8.000000e-01 : f32
    %25 = vector.broadcast %cst_14 : f32 to vector<4x4x4xf32>
    %26 = arith.mulf %24, %25 : vector<4x4x4xf32>
    %27 = arith.addf %26, %23 : vector<4x4x4xf32>
    %cst_15 = arith.constant 5.000000e-01 : f32
    %28 = vector.broadcast %cst_15 : f32 to vector<4x4x4xf32>
    %29 = arith.cmpf oge, %27, %28 : vector<4x4x4xf32>
    %30 = arith.extui %29 : vector<4x4x4xi1> to vector<4x4x4xi32>
    %31 = arith.sitofp %30 : vector<4x4x4xi32> to vector<4x4x4xf32>
    %c0_16 = arith.constant 0 : index
    %c0_17 = arith.constant 0 : index
    %c0_18 = arith.constant 0 : index
    %c0_19 = arith.constant 0 : index
    %32 = vector.load %arg4[%c0_16, %c0_17, %c0_18, %c0_19] : memref<1x4x4x4xf32, #tpu.memory_space<vmem>>, vector<1x4x4x4xf32>
    %33 = vector.shape_cast %32 : vector<1x4x4x4xf32> to vector<4x4x4xf32>
    %34 = vector.shape_cast %31 : vector<4x4x4xf32> to vector<1x4x4x4xf32>
    tpu.vector_store %arg4[%c0_16, %c0_17, %c0_18, %c0_19], %34 {strides = array<i32>} : memref<1x4x4x4xf32, #tpu.memory_space<vmem>>, vector<1x4x4x4xf32>,
    %cst_20 = arith.constant 1.000000e+00 : f32
    %35 = vector.broadcast %cst_20 : f32 to vector<4x4x4xf32>
    %36 = arith.subf %35, %31 : vector<4x4x4xf32>
    %37 = arith.mulf %27, %36 : vector<4x4x4xf32>
    %c0_21 = arith.constant 0 : index
    %c0_22 = arith.constant 0 : index
    %c0_23 = arith.constant 0 : index
    %38 = vector.load %arg5[%c0_21, %c0_22, %c0_23] : memref<4x4x4xf32, #tpu.memory_space<vmem>>, vector<4x4x4xf32>
    tpu.vector_store %arg5[%c0_21, %c0_22, %c0_23], %37 {strides = array<i32>} : memref<4x4x4xf32, #tpu.memory_space<vmem>>, vector<4x4x4xf32>,
    return
  }
  func.func @transform_0(%arg0: i32, %arg1: i32) -> (i32, i32, i32, i32) {
    %c0_i32 = arith.constant 0 : i32
    %c0_i32_0 = arith.constant 0 : i32
    %c0_i32_1 = arith.constant 0 : i32
    return %arg1, %arg0, %c0_i32, %c0_i32_0 : i32, i32, i32, i32
  }
  func.func @transform_1(%arg0: i32, %arg1: i32) -> (i32, i32) {
    %c0_i32 = arith.constant 0 : i32
    %c0_i32_0 = arith.constant 0 : i32
    %c0_i32_1 = arith.constant 0 : i32
    return %c0_i32, %c0_i32_0 : i32, i32
  }
  func.func @transform_2(%arg0: i32, %arg1: i32) -> (i32, i32, i32, i32) {
    %c0_i32 = arith.constant 0 : i32
    %c0_i32_0 = arith.constant 0 : i32
    %c0_i32_1 = arith.constant 0 : i32
    return %arg1, %arg0, %c0_i32, %c0_i32_0 : i32, i32, i32, i32
  }
}

</mosaic_0001>

<bundles_post_ra>
// kernel: spiking_avg_pool2d_forward.1
= control target key start
LH: loop header
LB: loop body
LE: loop exit
PB: predicated region body
PF: predicated region fallthrough
CT: control target
= control target key end

     0   :  { %7 = vsyncpa [#allocation4], 0  ;;  %s1029_s0 = inlined_call_operand.hbm [shape: f32[8,8,16,16], index: 0, kind: input, shape index: {}]   ;;  %s1030_s1 = inlined_call_operand.vmem [shape: f32[16,4], index: 1, kind: input, shape index: {}]   ;;  %s1031_s2 = inlined_call_operand.vmem [shape: f32[8,8,4,4], index: 2, kind: output, shape index: {}]  }
   0x1   :  { %9 = vsyncpa [#allocation4 + $0x1], 0  ;;  %s819_s9 = smov 0   ;;  %s821_s10 = smov 0  }
   0x2   :  { %s823_s11 = smov 0   ;;  %s825_s12 = smov 0  }
   0x3   :  { %s827_s13 = smov 0   ;;  %s829_s14 = smov 0  }
   0x4   :  { %s831_s15 = smov 0   ;;  %s833_s16 = smov 0  }
   0x5 LB: > { %s591_s17 = sadd.s32 4294967295, %s798_s16   ;;  %s24_s18 = sadd.s32 1, %s790_s14  ;;  %s798_s16 = sphi %s833_s16, %s15_s16   ;;  %s794_s15 = sphi %s831_s15, %s1040_s15   ;;  %s790_s14 = sphi %s829_s14, %s1039_s14   ;;  %s786_s13 = sphi %s827_s13, %s1038_s13   ;;  %s782_s12 = sphi %s825_s12, %s1037_s12   ;;  %s778_s11 = sphi %s823_s11, %s1036_s11   ;;  %s774_s10 = sphi %s821_s10, %s1035_s10   ;;  %s770_s9 = sphi %s819_s9, %s1034_s9  }
   0x6   : > { %p25_p0 = scmp.ge.s32.totalorder %s24_s18, 8  ;;  %s27_s19 = sadd.s32 1, %s794_s15 }
   0x7   : > { %s36_s20 = sadd.s32 1, %s778_s11  ;;  %p43_p1 = scmp.ne.s32.totalorder %s778_s11, %s774_s10 }
   0x8   : > { %s1042_s18 = smov (%p25_p0, %s24_s18), 0  ;;  %s1044_s19 = smov (!%p25_p0, %s27_s19), %s794_s15 }
   0x9   : > { %s31_s21 = ssub.s32 %s790_s14, %s1042_s18  ;;  %p44_p2 = scmp.eq.s32.totalorder %s798_s16, 0 }
   0xa   : > { %p29_p3 = scmp.ge.s32.totalorder %s1044_s19, 2  ;;  %p49_p4 = scmp.ne.s32.totalorder %s774_s10, %s770_s9 }
   0xb   : > { %p870_p5 = por %p44_p2, %p43_p1  ;;  %p50_p6 = scmp.eq.s32.totalorder %s591_s17, 0 }
   0xc   : > { %s1046_s19 = smov (%p29_p3, %s1044_s19), 0  ;;  %p633_p8 = scmp.lt.s32.totalorder %s798_s16, 16 }
   0xd   : > { %p876_p7 = por %p50_p6, %p49_p4  ;;  %s32_s24 = ssub.s32 %s794_s15, %s1046_s19 }
   0xe   : > { %s33_s25 = sor.u32 %s32_s24, %s31_s21  ;;  %s125_s26 = sand.u32 1, %s778_s11  }
   0xf   : > { %p34_p9 = scmp.eq.s32.totalorder %s33_s25, 0  ;;  %s595_s27 = sshll.u32 %s125_s26, 6 }
  0x10   : > { %s620_s28 = sshll.u32 %s794_s15, 3  ;;  %s598_s30 = sshll.u32 %s790_s14, 4 }
  0x11   : > { %s886_s29 = scalar_select %p34_p9, %s778_s11, %s36_s20  }
  0x12   : > { %s135_s3 = sadd.s32 %s620_s28, %s598_s30  ;;  %s129_s4 = scalar_lea.vmem [#allocation3], %s595_s27 }
  0x13   : > { %s140_s5 = sshll.u32 %s129_s4, 4  ;;  %s599_s6 = sshll.u32 %s135_s3, 3  ;;  %s141_s5 = int_to_ptr.vmem [resolvable:$true] %s140_s5 }
  0x14   : > { %s137_s9 = scalar_lea.hbm %s1029_s0, %s599_s6  ;;  %p630_p10 = pnand %p633_p8, %p870_p5 }
  0x15   : > { %s138_s17 = sshll.u32 %s137_s9, 4  ;;  %p600_p11 = scmp.ge.s32.totalorder %s798_s16, 1  ;;  %s139_s17 = int_to_ptr.hbm [resolvable:$true] %s138_s17 }
  0x16   : > { %s126_s21 = scalar_lea.sflag [#allocation4], %s125_s26  ;;  %s800_s20 = smov 128  }
  0x17   : > { %s801_s24 = smov 8   ;;  %p148_p12 = scmp.lt.s32.totalorder %s798_s16, 17 }
  0x18   : > { %632 = dma.hbm_to_vmem [thread:$0]  (!%p630_p10), %s139_s17, 1024, %s141_s5, %s126_s21, %s800_s20, %s800_s20, %s801_s24  }
  0x19   : > { %p149_p13 = pnand %p600_p11, %p148_p12 }
  0x1a   : > { %s154_s25 = sand.u32 (!%p149_p13), 1, %s774_s10  }
  0x1b   : > { %152 = sbr.rel (%p149_p13) target bundleno = 234 (0xea), region = 28  ;;  %s601_s27 = sshll.u32 (!%p149_p13), %s154_s25, 6 }
  0x1c   : > { %s155_s28 = scalar_lea.sflag (!%p149_p13), [#allocation4], %s154_s25  ;;  %s899_s30 = scalar_lea.vmem (!%p149_p13), [#allocation3], %s601_s27 }
  0x20   : > { %765 = dma.done.wait (%p876_p7), %s155_s28, 1024  }
  0x21   : > { %767 = vsyncadd (%p876_p7), %s155_s28, 4294966272  ;;  %s602_s22 = sshll.u32 %s786_s13, 2  ;;  %p186_p0 = scmp.lt.s32.totalorder %s782_s12, 7 }
  0x22   : > { %p188_p1 = scmp.lt.s32.totalorder %s602_s22, 7  ;;  %p605_p2 = scmp.ne.s32.totalorder %s782_s12, 0 }
  0x23   : > { %s187_s26 = scalar_select %p186_p0, %s782_s12, 7 }
  0x24   : > { %s1048_s22 = smov (!%p188_p1, %s602_s22), 7  ;;  %198 = sbr.rel (%p605_p2) target bundleno = 46 (0x2e), region = 36 }
  0x25   : > { %s603_s3 = sshll.u32 %s187_s26, 3 }
  0x26   : > { %s191_s4 = sadd.s32 %s603_s3, %s1048_s22 }
  0x27   : > { %s604_s5 = sshll.u32 %s191_s4, 2 }
  0x28   : > { %s911_s8 = scalar_lea.vmem %s1031_s2, %s604_s5 }
  0x29   : > { %vm199_vm0 = vcmask 27648   ;;  %v802_v0 = vmov 0.0  }
  0x2a   : > { %200 = vst.msk [vmem:[#allocation2] sm:$0xf] %vm199_vm0, %v802_v0 }
  0x2b   : > { %201 = vst.msk [vmem:[#allocation2 + $0x4] sm:$0xf] %vm199_vm0, %v802_v0 }
  0x2c   : > { %202 = vst.msk [vmem:[#allocation2 + $0x8] sm:$0xf] %vm199_vm0, %v802_v0 }
  0x2d   : > { %203 = vst.msk [vmem:[#allocation2 + $0xc] sm:$0xf] %vm199_vm0, %v802_v0 }
  0x2e PF: > { %v213_v1 = vld [vmem:[%s1030_s1 + $0x8] sm:$0xff]  ;;  %v212_v2 = vld [vmem:[%s1030_s1] sm:$0xff]  ;;  %v204_v3 = vld [vmem:[%s899_s30] sm:$0xff]  ;;  %vm214_vm1 = vcmask 130048   ;;  %vm280_vm2 = vcmask 28672   ;;  %vm434_vm3 = vcmask 1040384  }
  0x2f   : > { %253 = vmatpush.msra.mxu0 %v213_v1  ;;  %621 = vmatpush.msra.mxu1 %v213_v1  ;;  %v206_v4 = vld [vmem:[%s899_s30 + $0x10] sm:$0xff]  ;;  %v208_v5 = vld [vmem:[%s899_s30 + $0x20] sm:$0xff]  ;;  %v205_v7 = vld [vmem:[%s899_s30 + $0x8] sm:$0xff]  ;;  %vm353_vm4 = vcmask 1041408   ;;  %vm443_vm5 = vcmask 1042432   ;;  %vm476_vm6 = vcmask 27648  }
  0x30   : > { %622 = vmatpush.msra.mxu2 %v213_v1  ;;  %623 = vmatpush.msra.mxu3 %v213_v1  ;;  %v210_v6 = vld [vmem:[%s899_s30 + $0x30] sm:$0xff]  ;;  %v207_v8 = vld [vmem:[%s899_s30 + $0x18] sm:$0xff]  ;;  %v209_v9 = vld [vmem:[%s899_s30 + $0x28] sm:$0xff] }
  0x31   : > { %254 = vmatpush.msra.mxu0 %v212_v2  ;;  %624 = vmatpush.msra.mxu1 %v212_v2  ;;  %v211_v10 = vld [vmem:[%s899_s30 + $0x38] sm:$0xff]  ;;  %v452_v45 = vld [vmem:[#allocation2] sm:$0xf] }
  0x32   : > { %625 = vmatpush.msra.mxu2 %v212_v2  ;;  %626 = vmatpush.msra.mxu3 %v212_v2  ;;  %v453_v50 = vld [vmem:[#allocation2 + $0x4] sm:$0xf]  ;;  %v956_v60 = vmul.f32 0.8, %v452_v45 }
  0x33   : > { %606 = vmatmul.msk.f32.vlgmr.msra.gmra.mxu0 %vm214_vm1, %v204_v3  ;;  %608 = vmatmul.msk.f32.vlgmr.msra.gmra.mxu1 %vm214_vm1, %v206_v4  ;;  %v958_v61 = vmul.f32 0.8, %v453_v50 }
  0x34   : > { %610 = vmatmul.msk.f32.vlgmr.msra.gmra.mxu2 %vm214_vm1, %v208_v5  ;;  %612 = vmatmul.msk.f32.vlgmr.msra.gmra.mxu3 %vm214_vm1, %v210_v6 }
  0x3b   : > { %607 = vmatmul.msk.f32.gmra.mxu0 %vm214_vm1, %v205_v7  ;;  %609 = vmatmul.msk.f32.gmra.mxu1 %vm214_vm1, %v207_v8 }
  0x3c   : > { %611 = vmatmul.msk.f32.gmra.mxu2 %vm214_vm1, %v209_v9  ;;  %613 = vmatmul.msk.f32.gmra.mxu3 %vm214_vm1, %v211_v10 }
  0xb0   : > { %v256_v11 = vpop.f32.mrf.mxu0  ;;  %v936_v12 = vpop.f32.mrf.mxu1 }
  0xb1   : > { %v281_v13 = vsel %vm280_vm2, %v256_v11, 0.0  ;;  %v313_v14 = vrot.slane %v256_v11, 3  ;;  %v288_v15 = vsel %vm280_vm2, %v936_v12, 0.0  ;;  %v314_v18 = vrot.slane %v936_v12, 3 }
  0xb2   : > { %v282_v16 = vrot.slane %v281_v13, 4  ;;  %v289_v17 = vrot.slane %v288_v15, 4  ;;  %v354_v48 = vrot.slane %v256_v11, 6  ;;  %v357_v53 = vrot.slane %v936_v12, 6 }
  0xb3   : > { %v321_v19 = vsel %vm280_vm2, %v313_v14, 0.0  ;;  %v328_v23 = vsel %vm280_vm2, %v314_v18, 0.0 }
  0xb4   : > { %v283_v20 = vadd.f32 %v282_v16, %v281_v13  ;;  %v322_v21 = vrot.slane %v321_v19, 4  ;;  %v290_v22 = vadd.f32 %v289_v17, %v288_v15  ;;  %v329_v24 = vrot.slane %v328_v23, 4 }
  0xb6   : > { %v284_v25 = vrot.slane %v283_v20, 2  ;;  %v323_v26 = vadd.f32 %v322_v21, %v321_v19  ;;  %v291_v27 = vrot.slane %v290_v22, 2  ;;  %v330_v28 = vadd.f32 %v329_v24, %v328_v23 }
  0xb7   : > { %v944_v29 = vpop.f32.mrf.mxu2  ;;  %v946_v30 = vpop.f32.mrf.mxu3 }
  0xb8   : > { %v285_v31 = vadd.f32 %v284_v25, %v283_v20  ;;  %v324_v32 = vrot.slane %v323_v26, 2  ;;  %v295_v33 = vsel %vm280_vm2, %v944_v29, 0.0  ;;  %v292_v34 = vadd.f32 %v291_v27, %v290_v22  ;;  %v259_v44 = vpop.f32.mrf.mxu0  ;;  %v265_v2 = vpop.f32.mrf.mxu1 }
  0xb9   : > { %v331_v35 = vrot.slane %v330_v28, 2  ;;  %v296_v36 = vrot.slane %v295_v33, 4  ;;  %v315_v37 = vrot.slane %v944_v29, 3  ;;  %v302_v39 = vsel %vm280_vm2, %v946_v30, 0.0 }
  0xba   : > { %v325_v38 = vadd.f32 %v324_v32, %v323_v26  ;;  %v303_v43 = vrot.slane %v302_v39, 4  ;;  %v286_v46 = vrot.slane %v285_v31, 1  ;;  %v293_v51 = vrot.slane %v292_v34, 1 }
  0xbb   : > { %v332_v40 = vadd.f32 %v331_v35, %v330_v28  ;;  %v297_v41 = vadd.f32 %v296_v36, %v295_v33  ;;  %v335_v42 = vsel %vm280_vm2, %v315_v37, 0.0  ;;  %v316_v54 = vrot.slane %v946_v30, 3 }
  0xbc   : > { %v326_v47 = vrot.slane %v325_v38, 1  ;;  %v336_v49 = vrot.slane %v335_v42, 4  ;;  %v304_v57 = vadd.f32 %v303_v43, %v302_v39  ;;  %v355_v58 = vrot.slane %v259_v44, 6 }
  0xbd   : > { %v333_v52 = vrot.slane %v332_v40, 1  ;;  %v298_v55 = vrot.slane %v297_v41, 2  ;;  %v287_v62 = vadd.f32 %v286_v46, %v285_v31  ;;  %v360_v0 = vrot.slane %v944_v29, 6 }
  0xbe   : > { %v337_v56 = vadd.f32 %v336_v49, %v335_v42  ;;  %v327_v59 = vadd.f32 %v326_v47, %v325_v38  ;;  %v356_v1 = vsel %vm353_vm4, %v354_v48, %v355_v58  ;;  %v294_v3 = vadd.f32 %v293_v51, %v292_v34 }
  0xbf   : > { %v334_v4 = vadd.f32 %v333_v52, %v332_v40  ;;  %v342_v5 = vsel %vm280_vm2, %v316_v54, 0.0  ;;  %v370_v6 = vsel %vm280_vm2, %v356_v1, 0.0  ;;  %v299_v7 = vadd.f32 %v298_v55, %v297_v41  ;;  %v271_v19 = vpop.f32.mrf.mxu2  ;;  %v277_v48 = vpop.f32.mrf.mxu3 }
  0xc0   : > { %v338_v63 = vrot.slane %v337_v56, 2  ;;  %v305_v8 = vrot.slane %v304_v57, 2  ;;  %v371_v9 = vrot.slane %v370_v6, 4  ;;  %v398_v10 = vrot.slane %v259_v44, 1 }
  0xc1   : > { %v435_v11 = vsel %vm434_vm3, %v287_v62, %v327_v59  ;;  %v363_v12 = vrot.slane %v946_v30, 6  ;;  %v358_v13 = vrot.slane %v265_v2, 6  ;;  %v399_v14 = vrot.slane %v265_v2, 1 }
  0xc2   : > { %v339_v15 = vadd.f32 %v338_v63, %v337_v56  ;;  %v343_v16 = vrot.slane %v342_v5, 4  ;;  %v372_v17 = vadd.f32 %v371_v9, %v370_v6  ;;  %v406_v18 = vsel %vm280_vm2, %v398_v10, 0.0 }
  0xc3   : > { %v436_v20 = vsel %vm434_vm3, %v294_v3, %v334_v4  ;;  %v407_v21 = vrot.slane %v406_v18, 4  ;;  %v359_v22 = vsel %vm353_vm4, %v357_v53, %v358_v13  ;;  %v413_v23 = vsel %vm280_vm2, %v399_v14, 0.0 }
  0xc4   : > { %v300_v24 = vrot.slane %v299_v7, 1  ;;  %v970_v25 = vadd.f32 %v305_v8, %v304_v57  ;;  %v373_v26 = vrot.slane %v372_v17, 2  ;;  %v377_v27 = vsel %vm280_vm2, %v359_v22, 0.0 }
  0xc5   : > { %v408_v28 = vadd.f32 %v407_v21, %v406_v18  ;;  %v378_v29 = vrot.slane %v377_v27, 4  ;;  %v414_v30 = vrot.slane %v413_v23, 4  ;;  %v361_v31 = vrot.slane %v271_v19, 6 }
  0xc6   : > { %v340_v32 = vrot.slane %v339_v15, 1  ;;  %v344_v33 = vadd.f32 %v343_v16, %v342_v5  ;;  %v374_v34 = vadd.f32 %v373_v26, %v372_v17  ;;  %v400_v35 = vrot.slane %v271_v19, 1  ;;  %v454_v19 = vld [vmem:[#allocation2 + $0x8] sm:$0xf] }
  0xc7   : > { %v409_v36 = vrot.slane %v408_v28, 2  ;;  %v379_v37 = vadd.f32 %v378_v29, %v377_v27  ;;  %v415_v38 = vadd.f32 %v414_v30, %v413_v23  ;;  %v362_v39 = vsel %vm353_vm4, %v360_v0, %v361_v31 }
  0xc8   : > { %v301_v40 = vadd.f32 %v300_v24, %v299_v7  ;;  %v375_v41 = vrot.slane %v374_v34, 1  ;;  %v384_v42 = vsel %vm280_vm2, %v362_v39, 0.0  ;;  %v420_v43 = vsel %vm280_vm2, %v400_v35, 0.0 }
  0xc9   : > { %v410_v44 = vadd.f32 %v409_v36, %v408_v28  ;;  %v380_v45 = vrot.slane %v379_v37, 2  ;;  %v416_v46 = vrot.slane %v415_v38, 2  ;;  %v385_v47 = vrot.slane %v384_v42, 4 }
  0xca   : > { %v341_v49 = vadd.f32 %v340_v32, %v339_v15  ;;  %v345_v50 = vrot.slane %v344_v33, 2  ;;  %v376_v51 = vadd.f32 %v375_v41, %v374_v34  ;;  %v421_v52 = vrot.slane %v420_v43, 4 }
  0xcb   : > { %v411_v53 = vrot.slane %v410_v44, 1  ;;  %v381_v54 = vadd.f32 %v380_v45, %v379_v37  ;;  %v417_v55 = vadd.f32 %v416_v46, %v415_v38  ;;  %v386_v56 = vadd.f32 %v385_v47, %v384_v42 }
  0xcc   : > { %v439_v57 = vsel %vm353_vm4, %v435_v11, %v376_v51  ;;  %v422_v58 = vadd.f32 %v421_v52, %v420_v43  ;;  %v364_v59 = vrot.slane %v277_v48, 6  ;;  %v401_v62 = vrot.slane %v277_v48, 1 }
  0xcd   : > { %v412_v63 = vadd.f32 %v411_v53, %v410_v44  ;;  %v382_v0 = vrot.slane %v381_v54, 1  ;;  %v418_v1 = vrot.slane %v417_v55, 1  ;;  %v387_v2 = vrot.slane %v386_v56, 2 }
  0xce   : > { %v346_v3 = vadd.f32 %v345_v50, %v344_v33  ;;  %v423_v4 = vrot.slane %v422_v58, 2  ;;  %v365_v5 = vsel %vm353_vm4, %v363_v12, %v364_v59  ;;  %v427_v6 = vsel %vm280_vm2, %v401_v62, 0.0 }
  0xcf   : > { %v444_v7 = vsel %vm443_vm5, %v439_v57, %v412_v63  ;;  %v383_v8 = vadd.f32 %v382_v0, %v381_v54  ;;  %v419_v9 = vadd.f32 %v418_v1, %v417_v55  ;;  %v388_v10 = vadd.f32 %v387_v2, %v386_v56 }
  0xd0   : > { %v448_v13 = vmul.f32 0.04, %v444_v7  ;;  %v424_v11 = vadd.f32 %v423_v4, %v422_v58  ;;  %v391_v14 = vsel %vm280_vm2, %v365_v5, 0.0  ;;  %v428_v15 = vrot.slane %v427_v6, 4 }
  0xd1   : > { %v437_v16 = vsel %vm434_vm3, %v301_v40, %v341_v49  ;;  %v440_v17 = vsel %vm353_vm4, %v436_v20, %v383_v8  ;;  %v389_v18 = vrot.slane %v388_v10, 1  ;;  %v392_v21 = vrot.slane %v391_v14, 4  ;;  %v455_v49 = vld [vmem:[#allocation2 + $0xc] sm:$0xf] }
  0xd2   : > { %v460_v12 = vadd.f32 %v956_v60, %v448_v13  ;;  %v445_v22 = vsel %vm443_vm5, %v440_v17, %v419_v9  ;;  %v425_v23 = vrot.slane %v424_v11, 1  ;;  %v429_v24 = vadd.f32 %v428_v15, %v427_v6 }
  0xd3   : > { %v347_v26 = vrot.slane %v346_v3, 1  ;;  %v449_v27 = vmul.f32 0.04, %v445_v22  ;;  %v390_v28 = vadd.f32 %v389_v18, %v388_v10  ;;  %v393_v29 = vadd.f32 %v392_v21, %v391_v14 }
  0xd4   : > { %vm464_vm7 = vcmp.ge.f32.partialorder %v460_v12, 0.5  ;;  %v426_v30 = vadd.f32 %v425_v23, %v424_v11  ;;  %v458_v31 = vmul.f32 0.8, %v454_v19  ;;  %v430_v32 = vrot.slane %v429_v24, 2 }
  0xd5   : > { %v803_v33 = vmov 0.0   ;;  %v461_v34 = vadd.f32 %v958_v61, %v449_v27  ;;  %v441_v60 = vsel %vm353_vm4, %v437_v16, %v390_v28  ;;  %v394_v35 = vrot.slane %v393_v29, 2 }
  0xd6   : > { %v614_v20 = vsel %vm464_vm7, 1.0, %v803_v33  ;;  %v307_v36 = vrot.slane %v970_v25, 1  ;;  %v446_v38 = vsel %vm443_vm5, %v441_v60, %v426_v30  ;;  %v431_v39 = vadd.f32 %v430_v32, %v429_v24 }
  0xd7   : > { %477 = vst.msk [vmem:[%s911_s8] sm:$0xf] %vm476_vm6, %v614_v20  ;;  %v481_v37 = vsub.f32 1.0, %v614_v20  ;;  %vm465_vm8 = vcmp.ge.f32.partialorder %v461_v34, 0.5  ;;  %v450_v40 = vmul.f32 0.04, %v446_v38  ;;  %v395_v41 = vadd.f32 %v394_v35, %v393_v29 }
  0xd8   : > { %v348_v42 = vadd.f32 %v347_v26, %v346_v3  ;;  %v615_v44 = vsel %vm465_vm8, 1.0, %v803_v33  ;;  %v432_v45 = vrot.slane %v431_v39, 1  ;;  %v308_v48 = vadd.f32 %v307_v36, %v970_v25 }
  0xd9   : > { %v485_v43 = vmul.f32 %v481_v37, %v460_v12  ;;  %478 = vst.msk [vmem:[%s911_s8 + $0x4] sm:$0xf] %vm476_vm6, %v615_v44  ;;  %v482_v61 = vsub.f32 1.0, %v615_v44  ;;  %v462_v46 = vadd.f32 %v458_v31, %v450_v40  ;;  %v396_v47 = vrot.slane %v395_v41, 1 }
  0xda   : > { %v438_v52 = vsel %vm434_vm3, %v308_v48, %v348_v42  ;;  %v433_v54 = vadd.f32 %v432_v45, %v431_v39  ;;  %v459_v57 = vmul.f32 0.8, %v455_v49 }
  0xdb   : > { %489 = vst.msk [vmem:[#allocation2] sm:$0xf] %vm476_vm6, %v485_v43  ;;  %v486_v50 = vmul.f32 %v482_v61, %v461_v34  ;;  %vm466_vm9 = vcmp.ge.f32.partialorder %v462_v46, 0.5  ;;  %v397_v51 = vadd.f32 %v396_v47, %v395_v41 }
  0xdc   : > { %v616_v53 = vsel %vm466_vm9, 1.0, %v803_v33 }
  0xdd   : > { %490 = vst.msk [vmem:[#allocation2 + $0x4] sm:$0xf] %vm476_vm6, %v486_v50  ;;  %v483_v55 = vsub.f32 1.0, %v616_v53  ;;  %v442_v56 = vsel %vm353_vm4, %v438_v52, %v397_v51 }
  0xde   : > { %479 = vst.msk [vmem:[%s911_s8 + $0x8] sm:$0xf] %vm476_vm6, %v616_v53  ;;  %v447_v25 = vsel %vm443_vm5, %v442_v56, %v433_v54 }
  0xdf   : > { %v487_v58 = vmul.f32 %v483_v55, %v462_v46  ;;  %v451_v59 = vmul.f32 0.04, %v447_v25 }
  0xe1   : > { %491 = vst.msk [vmem:[#allocation2 + $0x8] sm:$0xf] %vm476_vm6, %v487_v58  ;;  %v463_v62 = vadd.f32 %v459_v57, %v451_v59 }
  0xe3   : > { %vm467_vm10 = vcmp.ge.f32.partialorder %v463_v62, 0.5 }
  0xe4   : > { %v617_v63 = vsel %vm467_vm10, 1.0, %v803_v33 }
  0xe5   : > { %480 = vst.msk [vmem:[%s911_s8 + $0xc] sm:$0xf] %vm476_vm6, %v617_v63  ;;  %v484_v0 = vsub.f32 1.0, %v617_v63 }
  0xe7   : > { %v488_v1 = vmul.f32 %v484_v0, %v463_v62 }
  0xe9   : > { %492 = vst.msk [vmem:[#allocation2 + $0xc] sm:$0xf] %vm476_vm6, %v488_v1 }
  0xea PF: > { %s15_s16 = sadd.s32 1, %s798_s16   ;;  %s1034_s9 = smov %s774_s10 }
  0xeb   : > { %p12_p3 = scmp.ge.s32.totalorder %s15_s16, 18   ;;  %s1035_s10 = smov %s778_s11 }
  0xec   : > { %s1036_s11 = smov %s886_s29  ;;  %s1037_s12 = smov %s790_s14 }
  0xed   : > { %s1038_s13 = smov %s794_s15  ;;  %s1039_s14 = smov %s1042_s18 }
  0xee   : > { %s1040_s15 = smov %s1046_s19  ;;  %14 = sbr.rel (!%p12_p3) target bundleno = 5 (0x5), region = 72 }
  0xf3   :  { %523 = vsyncpa [#allocation4], 1 }
  0xf4   :  { %525 = vsyncpa [#allocation4 + $0x1], 1 }

</bundles_post_ra>
